<compile_context>
chip_gen: v6e
topology: v6e:2x2x1
jax: 0.10.0
libtpu: 0.0.40
codegen_flags: <defaults>
</compile_context>

<pallas_src>
import math

import jax
import jax.numpy as jnp
import numpy as np
from jax.experimental import pallas as pl
from jax.experimental.pallas import tpu as pltpu


# Target byte budget for one input block (~85% roofline plateau; double
# buffered in + out blocks ~= 4x this, well under the 32 MiB scoped limit).
_DEFAULT_MAX_BLOCK_BYTES = 4 * 1024 * 1024
_VMEM_LIMIT_BYTES = 32 * 1024 * 1024


def _power_reallocate_kernel(x_ref, wt_ref, o_ref):
    # x_ref : (tb, tn)  block of flattened, lane-dense rows
    # wt_ref: (1,  tn)  fused per-(position, rate) scale, broadcast over rows
    o_ref[...] = x_ref[...] * wt_ref[...]


def _pick_lane_block(width, itemsize, max_block_bytes):
    """Lane block: multiple of 128, <= width, 8 rows of it fit the budget.

    Prefers an exact divisor of `width` so no partially-masked edge block is
    generated (width is always a multiple of 128 here).
    """
    max_elems = max(1, max_block_bytes // itemsize)
    target = (max_elems // 8 // 128) * 128
    target = max(128, min(width, target))
    if width % target == 0:
        return target
    for cand in range(target, 127, -128):
        if width % cand == 0:
            return cand
    return target  # fallback: Pallas masks the ragged edge block


def _pick_row_block(nrows, tn, itemsize, max_block_bytes):
    """Rows per block: multiple of 8 (or == nrows) to satisfy the (8,128) rule."""
    if nrows <= 8:
        return nrows
    max_elems = max(1, max_block_bytes // itemsize)
    tb = max(8, (max_elems // tn // 8) * 8)
    return min(tb, nrows)


def _dimension_semantics_candidates():
    """Best-first list of dimension_semantics for the (rows, lanes) grid."""
    cands = []
    core_par = getattr(pltpu, "CORE_PARALLEL", None)
    if core_par is not None:
        # v7x: shard the row axis across both TensorCores.
        cands.append((core_par, pltpu.PARALLEL))
    cands.append((pltpu.PARALLEL, pltpu.PARALLEL))
    cands.append((pltpu.ARBITRARY, pltpu.ARBITRARY))
    return cands


def power_reallocate(inputs, weight1, weight2,
                     max_block_bytes=_DEFAULT_MAX_BLOCK_BYTES):
    """JAX/Pallas equivalent of Power_reallocate.forward with args.allreloc == 0.

    inputs : (B, L, R) float   (batch, seqLen, rate)
    weight1: (R,)      float
    weight2: (9,)      float
    """
    B, L, R = inputs.shape
    assert L >= 9, "seqLen must be >= 9 (matches the 9-index scatter)"

    # --- glue: weight normalizations + 9-index scatter (tiny, f32) --------
    w1 = weight1.astype(jnp.float32)
    w2 = weight2.astype(jnp.float32)
    wt1 = jnp.sqrt(w1 ** 2 * R / jnp.sum(w1 ** 2))                    # (R,)
    w2n = jnp.sqrt(w2 ** 2 * 9.0 / jnp.sum(w2 ** 2))                  # (9,)

    temp = jnp.array([0, 1, 2, 3, L - 5, L - 4, L - 3, L - 2, L - 1],
                     dtype=jnp.int32)
    wt2 = jnp.ones((L,), dtype=jnp.float32).at[temp].set(w2n)          # (L,)

    # Fused weight (formed in f32, cast once): wt[l, r] = wt2[l] * wt1[r].
    wt_row = (wt2[:, None] * wt1[None, :]).reshape(-1)                 # (F,)
    F = L * R
    itemsize = jnp.dtype(inputs.dtype).itemsize

    # --- lane-dense view: make the flattened row width a multiple of 128 --
    g = 128 // math.gcd(F, 128)          # rows grouped per lane-dense super-row
    B_pad = ((B + g - 1) // g) * g
    x_flat = inputs.reshape(B, F)
    if B_pad != B:
        x_flat = jnp.pad(x_flat, ((0, B_pad - B), (0, 0)))
    nrows = B_pad // g
    width = g * F                        # multiple of 128 by construction
    x2 = x_flat.reshape(nrows, width)
    wt = jnp.tile(wt_row, g).reshape(1, width).astype(inputs.dtype)

    # --- block / grid selection -------------------------------------------
    tn = _pick_lane_block(width, itemsize, max_block_bytes)
    tb = _pick_row_block(nrows, tn, itemsize, max_block_bytes)
    grid = (pl.cdiv(nrows, tb), pl.cdiv(width, tn))
    # TODO(synk): when tb is forced to 8 with tiny blocks, pipeline_mode=
    # pl.Buffered(3) on the x/out specs can hide per-step DMA latency.

    def build_call(dim_sems):
        return pl.pallas_call(
            _power_reallocate_kernel,
            out_shape=jax.ShapeDtypeStruct((nrows, width), inputs.dtype),
            grid_spec=pltpu.PrefetchScalarGridSpec(
                num_scalar_prefetch=0,
                grid=grid,
                in_specs=[
                    pl.BlockSpec((tb, tn), lambda i, j: (i, j)),   # x rows
                    pl.BlockSpec((1, tn), lambda i, j: (0, j)),    # fused weight
                ],
                out_specs=pl.BlockSpec((tb, tn), lambda i, j: (i, j)),
            ),
            compiler_params=pltpu.CompilerParams(
                dimension_semantics=dim_sems,
                vmem_limit_bytes=_VMEM_LIMIT_BYTES),
        )

    out2 = None
    last_err = None
    for sems in _dimension_semantics_candidates():
        try:
            out2 = build_call(sems)(x2, wt)
            out2 = jax.block_until_ready(out2)
            break
        except Exception as e:  # e.g. CORE_PARALLEL unsupported on this chip
            last_err = e
            out2 = None
            continue
    if out2 is None:
        raise last_err

    out_flat = out2.reshape(B_pad, F)[:B]
    return out_flat.reshape(B, L, R)


def power_reallocate_ref(inputs, weight1, weight2):
    """Pure-JAX reference mirroring the PyTorch forward (allreloc == 0)."""
    B, L, R = inputs.shape
    wt1 = jnp.sqrt(weight1 ** 2 * R / jnp.sum(weight1 ** 2))
    inputs1 = inputs * wt1
    w2n = jnp.sqrt(weight2 ** 2 * 9.0 / jnp.sum(weight2 ** 2))
    temp = jnp.array([0, 1, 2, 3, L - 5, L - 4, L - 3, L - 2, L - 1],
                     dtype=jnp.int32)
    wt2 = jnp.ones((L, 1), dtype=inputs.dtype)
    wt2 = wt2.at[temp].set(w2n[:, None].astype(inputs.dtype))
    return inputs1 * wt2


if __name__ == "__main__":
    key = jax.random.PRNGKey(0)
    k_x, k_w1, k_w2, k_x2, k_x3 = jax.random.split(key, 5)

    # Case 1: toy shape matching the module defaults (batch=2, seqLen=16, rate=8).
    B, L, R = 2, 16, 8
    x = jax.random.normal(k_x, (B, L, R), dtype=jnp.float32)
    # The PyTorch __init__ uses uniform_(1.0, 1.0) (all ones); use non-trivial
    # values here so the kernel is exercised meaningfully.
    weight1 = jax.random.uniform(k_w1, (R,), minval=0.5, maxval=1.5,
                                 dtype=jnp.float32)
    weight2 = jax.random.uniform(k_w2, (9,), minval=0.5, maxval=1.5,
                                 dtype=jnp.float32)

    out = jax.block_until_ready(power_reallocate(x, weight1, weight2))
    ref = power_reallocate_ref(x, weight1, weight2)
    np.testing.assert_allclose(np.asarray(out), np.asarray(ref),
                               rtol=1e-5, atol=1e-5)

    # Case 2: L*R = 160 (not a multiple of 128) -> lane-dense row grouping
    # (g=4), plus a tiny block budget to exercise the 2-D (rows, lanes) grid.
    B2, L2, R2 = 32, 20, 8
    x2 = jax.random.normal(k_x2, (B2, L2, R2), dtype=jnp.float32)
    out2 = jax.block_until_ready(
        power_reallocate(x2, weight1, weight2, max_block_bytes=2048))
    ref2 = power_reallocate_ref(x2, weight1, weight2)
    np.testing.assert_allclose(np.asarray(out2), np.asarray(ref2),
                               rtol=1e-5, atol=1e-5)

    # Case 3: batch not a multiple of the row-grouping factor (padding path).
    B3, L3, R3 = 5, 20, 8
    x3 = jax.random.normal(k_x3, (B3, L3, R3), dtype=jnp.float32)
    out3 = jax.block_until_ready(power_reallocate(x3, weight1, weight2))
    ref3 = power_reallocate_ref(x3, weight1, weight2)
    np.testing.assert_allclose(np.asarray(out3), np.asarray(ref3),
                               rtol=1e-5, atol=1e-5)

    # TODO(synk): args.allreloc != 0 branch relies on shape-incompatible
    # indexing assignment in the original PyTorch (weight2 of shape (K, rate)
    # scattered into a (seqLen, 1) tensor) and is not implemented.
    print("KERNEL_OK")
</pallas_src>

<mosaic_0001>
module attributes {stable_mosaic.version = 11 : i64} {
  func.func @_power_reallocate_kernel(%arg0: i32, %arg1: i32, %arg2: memref<2x128xf32, #tpu.memory_space<vmem>>, %arg3: memref<1x128xf32, #tpu.memory_space<vmem>>, %arg4: memref<2x128xf32, #tpu.memory_space<vmem>>) attributes {dimension_semantics = [#tpu.dimension_semantics<core_parallel>, #tpu.dimension_semantics<parallel>], iteration_bounds = array<i64: 1, 1>, scalar_prefetch = 0 : i64, scratch_operands = 0 : i64, tpu.core_type = #tpu.core_type<tc>, window_params = [{transform_indices = @transform_0, window_bounds = array<i64: 2, 128>}, {transform_indices = @transform_1, window_bounds = array<i64: 1, 128>}, {transform_indices = @transform_2, window_bounds = array<i64: 2, 128>}]} {
    %c0 = arith.constant 0 : index
    %c0_0 = arith.constant 0 : index
    %0 = vector.load %arg2[%c0, %c0_0] : memref<2x128xf32, #tpu.memory_space<vmem>>, vector<2x128xf32>
    %c0_1 = arith.constant 0 : index
    %c0_2 = arith.constant 0 : index
    %1 = vector.load %arg3[%c0_1, %c0_2] : memref<1x128xf32, #tpu.memory_space<vmem>>, vector<1x128xf32>
    %2 = vector.broadcast %1 : vector<1x128xf32> to vector<2x128xf32>
    %3 = arith.mulf %0, %2 : vector<2x128xf32>
    %c0_3 = arith.constant 0 : index
    %c0_4 = arith.constant 0 : index
    %4 = vector.load %arg4[%c0_3, %c0_4] : memref<2x128xf32, #tpu.memory_space<vmem>>, vector<2x128xf32>
    tpu.vector_store %arg4[%c0_3, %c0_4], %3 {strides = array<i32>} : memref<2x128xf32, #tpu.memory_space<vmem>>, vector<2x128xf32>,
    return
  }
  func.func @transform_0(%arg0: i32, %arg1: i32) -> (i32, i32) {
    %c0_i32 = arith.constant 0 : i32
    return %arg0, %arg1 : i32, i32
  }
  func.func @transform_1(%arg0: i32, %arg1: i32) -> (i32, i32) {
    %c0_i32 = arith.constant 0 : i32
    %c0_i32_0 = arith.constant 0 : i32
    return %c0_i32, %arg1 : i32, i32
  }
  func.func @transform_2(%arg0: i32, %arg1: i32) -> (i32, i32) {
    %c0_i32 = arith.constant 0 : i32
    return %arg0, %arg1 : i32, i32
  }
}

module attributes {stable_mosaic.version = 11 : i64} {
  func.func @_power_reallocate_kernel(%arg0: i32, %arg1: i32, %arg2: memref<2x128xf32, #tpu.memory_space<vmem>>, %arg3: memref<1x128xf32, #tpu.memory_space<vmem>>, %arg4: memref<2x128xf32, #tpu.memory_space<vmem>>) attributes {dimension_semantics = [#tpu.dimension_semantics<parallel>, #tpu.dimension_semantics<parallel>], iteration_bounds = array<i64: 1, 1>, scalar_prefetch = 0 : i64, scratch_operands = 0 : i64, tpu.core_type = #tpu.core_type<tc>, window_params = [{transform_indices = @transform_0, window_bounds = array<i64: 2, 128>}, {transform_indices = @transform_1, window_bounds = array<i64: 1, 128>}, {transform_indices = @transform_2, window_bounds = array<i64: 2, 128>}]} {
    %c0 = arith.constant 0 : index
    %c0_0 = arith.constant 0 : index
    %0 = vector.load %arg2[%c0, %c0_0] : memref<2x128xf32, #tpu.memory_space<vmem>>, vector<2x128xf32>
    %c0_1 = arith.constant 0 : index
    %c0_2 = arith.constant 0 : index
    %1 = vector.load %arg3[%c0_1, %c0_2] : memref<1x128xf32, #tpu.memory_space<vmem>>, vector<1x128xf32>
    %2 = vector.broadcast %1 : vector<1x128xf32> to vector<2x128xf32>
    %3 = arith.mulf %0, %2 : vector<2x128xf32>
    %c0_3 = arith.constant 0 : index
    %c0_4 = arith.constant 0 : index
    %4 = vector.load %arg4[%c0_3, %c0_4] : memref<2x128xf32, #tpu.memory_space<vmem>>, vector<2x128xf32>
    tpu.vector_store %arg4[%c0_3, %c0_4], %3 {strides = array<i32>} : memref<2x128xf32, #tpu.memory_space<vmem>>, vector<2x128xf32>,
    return
  }
  func.func @transform_0(%arg0: i32, %arg1: i32) -> (i32, i32) {
    %c0_i32 = arith.constant 0 : i32
    return %arg0, %arg1 : i32, i32
  }
  func.func @transform_1(%arg0: i32, %arg1: i32) -> (i32, i32) {
    %c0_i32 = arith.constant 0 : i32
    %c0_i32_0 = arith.constant 0 : i32
    return %c0_i32, %arg1 : i32, i32
  }
  func.func @transform_2(%arg0: i32, %arg1: i32) -> (i32, i32) {
    %c0_i32 = arith.constant 0 : i32
    return %arg0, %arg1 : i32, i32
  }
}

module attributes {stable_mosaic.version = 11 : i64} {
  func.func @_power_reallocate_kernel(%arg0: i32, %arg1: i32, %arg2: memref<2x128xf32, #tpu.memory_space<vmem>>, %arg3: memref<1x128xf32, #tpu.memory_space<vmem>>, %arg4: memref<2x128xf32, #tpu.memory_space<vmem>>) attributes {dimension_semantics = [#tpu.dimension_semantics<arbitrary>, #tpu.dimension_semantics<arbitrary>], iteration_bounds = array<i64: 1, 1>, scalar_prefetch = 0 : i64, scratch_operands = 0 : i64, tpu.core_type = #tpu.core_type<tc>, window_params = [{transform_indices = @transform_0, window_bounds = array<i64: 2, 128>}, {transform_indices = @transform_1, window_bounds = array<i64: 1, 128>}, {transform_indices = @transform_2, window_bounds = array<i64: 2, 128>}]} {
    %c0 = arith.constant 0 : index
    %c0_0 = arith.constant 0 : index
    %0 = vector.load %arg2[%c0, %c0_0] : memref<2x128xf32, #tpu.memory_space<vmem>>, vector<2x128xf32>
    %c0_1 = arith.constant 0 : index
    %c0_2 = arith.constant 0 : index
    %1 = vector.load %arg3[%c0_1, %c0_2] : memref<1x128xf32, #tpu.memory_space<vmem>>, vector<1x128xf32>
    %2 = vector.broadcast %1 : vector<1x128xf32> to vector<2x128xf32>
    %3 = arith.mulf %0, %2 : vector<2x128xf32>
    %c0_3 = arith.constant 0 : index
    %c0_4 = arith.constant 0 : index
    %4 = vector.load %arg4[%c0_3, %c0_4] : memref<2x128xf32, #tpu.memory_space<vmem>>, vector<2x128xf32>
    tpu.vector_store %arg4[%c0_3, %c0_4], %3 {strides = array<i32>} : memref<2x128xf32, #tpu.memory_space<vmem>>, vector<2x128xf32>,
    return
  }
  func.func @transform_0(%arg0: i32, %arg1: i32) -> (i32, i32) {
    %c0_i32 = arith.constant 0 : i32
    return %arg0, %arg1 : i32, i32
  }
  func.func @transform_1(%arg0: i32, %arg1: i32) -> (i32, i32) {
    %c0_i32 = arith.constant 0 : i32
    %c0_i32_0 = arith.constant 0 : i32
    return %c0_i32, %arg1 : i32, i32
  }
  func.func @transform_2(%arg0: i32, %arg1: i32) -> (i32, i32) {
    %c0_i32 = arith.constant 0 : i32
    return %arg0, %arg1 : i32, i32
  }
}

</mosaic_0001>

<bundles_post_ra>
// kernel: tpu_custom_call.1
= control target key start
LH: loop header
LB: loop body
LE: loop exit
PB: predicated region body
PF: predicated region fallthrough
CT: control target
= control target key end

     0   :  { %s127_s9 = sld [smem:[#allocation0]]   ;;  %s145_s0 = inlined_call_operand.hbm [shape: f32[2,128], index: 0, kind: input, shape index: {}]   ;;  %s146_s1 = inlined_call_operand.vmem [shape: f32[1,128], index: 1, kind: input, shape index: {}]   ;;  %s147_s2 = inlined_call_operand.hbm [shape: f32[2,128], index: 2, kind: output, shape index: {}]  }
   0x1   :  { %7 = vsyncpa [#allocation3], 0 }
   0x2   :  { %8 = vsyncpa [#allocation4], 0  ;;  %s110_s14 = smov [#allocation2]   ;;  %s64_s19 = scalar_lea.hbm %s145_s0, 32 }
   0x3   :  { %s17_s15 = sshll.u32 %s110_s14, 4  ;;  %s18_s15 = int_to_ptr.vmem [resolvable:$true] %s17_s15 }
   0x6   :  { %s57_s10 = sshll.u32 %s127_s9, 5 }
   0x7   :  { %s15_s13 = scalar_lea.hbm %s145_s0, %s57_s10 }
   0x8   :  { %s62_s16 = scalar_lea.hbm %s15_s13, 32 }
   0x9   :  { %p63_p0 = scmp.ne.s32.totalorder %s15_s13, %s62_s16  ;;  %p66_p1 = scmp.lt.s32.totalorder %s64_s19, %s62_s16 }
   0xb   :  { %p68_p2 = pnand %p66_p1, %p63_p0 }
   0xd   :  { %71 = shalt.err (!%p68_p2)
}
   0xe   :  { %s72_s20 = scalar_lea.vmem %s18_s15, 32  ;;  %p77_p4 = scmp.lt.s32.totalorder %s18_s15, %s18_s15 }
   0xf   :  { %p73_p3 = scmp.ne.s32.totalorder %s18_s15, %s72_s20  ;;  %p78_p5 = scmp.lt.s32.totalorder %s72_s20, %s72_s20 }
  0x11   :  { %p79_p6 = por %p78_p5, %p77_p4 }
  0x13   :  { %p80_p7 = pnand %p79_p6, %p73_p3 }
  0x15   :  { %83 = shalt.err (!%p80_p7)
}
  0x16   :  { %20 = dma.hbm_to_vmem [thread:$0]  %s15_s13, 32, %s18_s15, [#allocation3]  }
  0x17   :  { %106 = dma.done.wait [#allocation3], 32  }
  0x18   :  { %107 = vsyncadd [#allocation3], 4294967264  ;;  %s111_s21 = smov [#allocation5]   ;;  %v26_v0 = vld [vmem:[#allocation2] sm:$0x3]  ;;  %s42_s26 = scalar_lea.hbm %s147_s2, %s57_s10 }
  0x19   :  { %s44_s22 = sshll.u32 %s111_s21, 4  ;;  %v58_v1 = vld [vmem:[%s146_s1] ss:$0 sm:$0xff]  ;;  %s45_s22 = int_to_ptr.vmem [resolvable:$true] %s44_s22 }
  0x1a   :  { %v34_v2 = vmul.f32 %v58_v1, %v26_v0  ;;  %s84_s27 = scalar_lea.vmem %s45_s22, 32  ;;  %p89_p9 = scmp.lt.s32.totalorder %s45_s22, %s45_s22 }
  0x1b   :  { %p85_p8 = scmp.ne.s32.totalorder %s45_s22, %s84_s27  ;;  %p90_p10 = scmp.lt.s32.totalorder %s84_s27, %s84_s27 }
  0x1c   :  { %35 = vst [vmem:[#allocation5] sm:$0x3] %v34_v2 }
  0x1d   :  { %p91_p11 = por %p90_p10, %p89_p9 }
  0x1f   :  { %p92_p12 = pnand %p91_p11, %p85_p8 }
  0x21   :  { %95 = shalt.err (!%p92_p12)
}
  0x22   :  { %s96_s28 = scalar_lea.hbm %s42_s26, 32  ;;  %s98_s1 = scalar_lea.hbm %s147_s2, 32 }
  0x23   :  { %p97_p13 = scmp.ne.s32.totalorder %s42_s26, %s96_s28  ;;  %p100_p0 = scmp.lt.s32.totalorder %s98_s1, %s96_s28 }
  0x25   :  { %p102_p1 = pnand %p100_p0, %p97_p13 }
  0x27   :  { %105 = shalt.err (!%p102_p1)
}
  0x28   :  { %47 = dma.vmem_to_hbm [thread:$0]  %s45_s22, 32, %s42_s26, [#allocation4]  }
  0x29   :  { %108 = dma.done.wait [#allocation4], 32  }
  0x2a   :  { %109 = vsyncadd [#allocation4], 4294967264 }
  0x2b   :  { %51 = vsyncpa [#allocation3], 1 }
  0x2c   :  { %52 = vsyncpa [#allocation4], 1 }

// kernel: tpu_custom_call.1
= control target key start
LH: loop header
LB: loop body
LE: loop exit
PB: predicated region body
PF: predicated region fallthrough
CT: control target
= control target key end

     0   :  { %7 = vsyncpa [#allocation3], 0  ;;  %s122_s0 = inlined_call_operand.hbm [shape: f32[2,128], index: 0, kind: input, shape index: {}]   ;;  %s123_s1 = inlined_call_operand.vmem [shape: f32[1,128], index: 1, kind: input, shape index: {}]   ;;  %s124_s2 = inlined_call_operand.hbm [shape: f32[2,128], index: 2, kind: output, shape index: {}]  }
   0x1   :  { %8 = vsyncpa [#allocation4], 0  ;;  %s96_s9 = smov [#allocation2]  }
   0x2   :  { %s15_s10 = sshll.u32 %s96_s9, 4  ;;  %s16_s10 = int_to_ptr.vmem [resolvable:$true] %s15_s10 }
   0x3   :  { %s60_s11 = scalar_lea.vmem %s16_s10, 32  ;;  %p65_p1 = scmp.lt.s32.totalorder %s16_s10, %s16_s10 }
   0x4   :  { %p61_p0 = scmp.ne.s32.totalorder %s16_s10, %s60_s11  ;;  %p66_p2 = scmp.lt.s32.totalorder %s60_s11, %s60_s11 }
   0x6   :  { %p67_p3 = por %p66_p2, %p65_p1 }
   0x8   :  { %p68_p4 = pnand %p67_p3, %p61_p0 }
   0xa   :  { %71 = shalt.err (!%p68_p4)
}
   0xb   :  { %18 = dma.hbm_to_vmem [thread:$0]  %s122_s0, 32, %s16_s10, [#allocation3]  }
   0xc   :  { %92 = dma.done.wait [#allocation3], 32  }
   0xd   :  { %93 = vsyncadd [#allocation3], 4294967264  ;;  %s97_s14 = smov [#allocation5]   ;;  %v24_v0 = vld [vmem:[#allocation2] sm:$0x3] }
   0xe   :  { %s40_s15 = sshll.u32 %s97_s14, 4  ;;  %v49_v1 = vld [vmem:[%s123_s1] ss:$0 sm:$0xff]  ;;  %s41_s15 = int_to_ptr.vmem [resolvable:$true] %s40_s15 }
   0xf   :  { %v32_v2 = vmul.f32 %v49_v1, %v24_v0  ;;  %s72_s18 = scalar_lea.vmem %s41_s15, 32  ;;  %p77_p6 = scmp.lt.s32.totalorder %s41_s15, %s41_s15 }
  0x10   :  { %p73_p5 = scmp.ne.s32.totalorder %s41_s15, %s72_s18  ;;  %p78_p7 = scmp.lt.s32.totalorder %s72_s18, %s72_s18 }
  0x11   :  { %33 = vst [vmem:[#allocation5] sm:$0x3] %v32_v2 }
  0x12   :  { %p79_p8 = por %p78_p7, %p77_p6 }
  0x14   :  { %p80_p9 = pnand %p79_p8, %p73_p5 }
  0x16   :  { %83 = shalt.err (!%p80_p9)
}
  0x17   :  { %43 = dma.vmem_to_hbm [thread:$0]  %s41_s15, 32, %s124_s2, [#allocation4]  }
  0x18   :  { %94 = dma.done.wait [#allocation4], 32  }
  0x19   :  { %95 = vsyncadd [#allocation4], 4294967264 }
  0x1a   :  { %47 = vsyncpa [#allocation3], 1 }
  0x1b   :  { %48 = vsyncpa [#allocation4], 1 }

// kernel: tpu_custom_call.1
= control target key start
LH: loop header
LB: loop body
LE: loop exit
PB: predicated region body
PF: predicated region fallthrough
CT: control target
= control target key end

     0   :  { %7 = vsyncpa [#allocation3], 0  ;;  %s122_s0 = inlined_call_operand.hbm [shape: f32[2,128], index: 0, kind: input, shape index: {}]   ;;  %s123_s1 = inlined_call_operand.vmem [shape: f32[1,128], index: 1, kind: input, shape index: {}]   ;;  %s124_s2 = inlined_call_operand.hbm [shape: f32[2,128], index: 2, kind: output, shape index: {}]  }
   0x1   :  { %8 = vsyncpa [#allocation4], 0  ;;  %s96_s9 = smov [#allocation2]  }
   0x2   :  { %s15_s10 = sshll.u32 %s96_s9, 4  ;;  %s16_s10 = int_to_ptr.vmem [resolvable:$true] %s15_s10 }
   0x3   :  { %s60_s11 = scalar_lea.vmem %s16_s10, 32  ;;  %p65_p1 = scmp.lt.s32.totalorder %s16_s10, %s16_s10 }
   0x4   :  { %p61_p0 = scmp.ne.s32.totalorder %s16_s10, %s60_s11  ;;  %p66_p2 = scmp.lt.s32.totalorder %s60_s11, %s60_s11 }
   0x6   :  { %p67_p3 = por %p66_p2, %p65_p1 }
   0x8   :  { %p68_p4 = pnand %p67_p3, %p61_p0 }
   0xa   :  { %71 = shalt.err (!%p68_p4)
}
   0xb   :  { %18 = dma.hbm_to_vmem [thread:$0]  %s122_s0, 32, %s16_s10, [#allocation3]  }
   0xc   :  { %92 = dma.done.wait [#allocation3], 32  }
   0xd   :  { %93 = vsyncadd [#allocation3], 4294967264  ;;  %s97_s14 = smov [#allocation5]   ;;  %v24_v0 = vld [vmem:[#allocation2] sm:$0x3] }
   0xe   :  { %s40_s15 = sshll.u32 %s97_s14, 4  ;;  %v49_v1 = vld [vmem:[%s123_s1] ss:$0 sm:$0xff]  ;;  %s41_s15 = int_to_ptr.vmem [resolvable:$true] %s40_s15 }
   0xf   :  { %v32_v2 = vmul.f32 %v49_v1, %v24_v0  ;;  %s72_s18 = scalar_lea.vmem %s41_s15, 32  ;;  %p77_p6 = scmp.lt.s32.totalorder %s41_s15, %s41_s15 }
  0x10   :  { %p73_p5 = scmp.ne.s32.totalorder %s41_s15, %s72_s18  ;;  %p78_p7 = scmp.lt.s32.totalorder %s72_s18, %s72_s18 }
  0x11   :  { %33 = vst [vmem:[#allocation5] sm:$0x3] %v32_v2 }
  0x12   :  { %p79_p8 = por %p78_p7, %p77_p6 }
  0x14   :  { %p80_p9 = pnand %p79_p8, %p73_p5 }
  0x16   :  { %83 = shalt.err (!%p80_p9)
}
  0x17   :  { %43 = dma.vmem_to_hbm [thread:$0]  %s41_s15, 32, %s124_s2, [#allocation4]  }
  0x18   :  { %94 = dma.done.wait [#allocation4], 32  }
  0x19   :  { %95 = vsyncadd [#allocation4], 4294967264 }
  0x1a   :  { %47 = vsyncpa [#allocation3], 1 }
  0x1b   :  { %48 = vsyncpa [#allocation4], 1 }

</bundles_post_ra>
